<compile_context>
chip_gen: v6e
topology: v6e:2x2x1
jax: 0.10.0
libtpu: 0.0.40
codegen_flags: <defaults>
</compile_context>

<pallas_src>
import functools

import jax
import jax.numpy as jnp
from jax.experimental import pallas as pl
from jax.experimental.pallas import tpu as pltpu

LOG_STD_MAX = 2.0
LOG_STD_MIN = -5.0
HIDDEN = 256
HEAD_PAD = 128          # lane-dense fused-head width: [mean | log_std | zero pad]


def _round_up(x, m):
    return (x + m - 1) // m * m


def _make_actor_kernel(obs_pad, act_dim):
    # static row offsets into the packed weight slab (all multiples of 16,
    # so every slice is bf16 (16,128)-tile aligned -> pure views, no copies)
    r_w1 = 0
    r_w2 = r_w1 + obs_pad
    r_w3 = r_w2 + HIDDEN
    r_wh = r_w3 + HIDDEN

    def kernel(x_ref, w_ref, b_ref, out_ref):
        # bf16 into the MXU, f32 accumulation; VPU/EUP math stays f32
        x = x_ref[...].astype(jnp.bfloat16)

        h = jnp.dot(x, w_ref[r_w1:r_w2, :], preferred_element_type=jnp.float32)
        h = jnp.maximum(h + b_ref[0:1, :], 0.0)

        h = jnp.dot(h.astype(jnp.bfloat16), w_ref[r_w2:r_w3, :],
                    preferred_element_type=jnp.float32)
        h = jnp.maximum(h + b_ref[1:2, :], 0.0)

        h = jnp.dot(h.astype(jnp.bfloat16), w_ref[r_w3:r_wh, :],
                    preferred_element_type=jnp.float32)
        h = jnp.maximum(h + b_ref[2:3, :], 0.0)

        # fused heads: lanes [0, act) = mean, [act, 2*act) = log_std, rest pad
        head = jnp.dot(h.astype(jnp.bfloat16), w_ref[r_wh:r_wh + HIDDEN, :HEAD_PAD],
                       preferred_element_type=jnp.float32)
        head = head + b_ref[3:4, :HEAD_PAD]

        # tanh-squash + affine remap applied only on the log_std lanes
        squashed = LOG_STD_MIN + 0.5 * (LOG_STD_MAX - LOG_STD_MIN) * (jnp.tanh(head) + 1.0)
        lane = jax.lax.broadcasted_iota(jnp.int32, head.shape, 1)
        out = jnp.where(lane < act_dim, head, squashed)
        out_ref[...] = out.astype(out_ref.dtype)

    return kernel


def pack_params(params, obs_dim, act_dim):
    """Pack the 10 Linear tensors into one bf16 weight slab + one f32 bias slab."""
    assert 2 * act_dim <= HEAD_PAD, "fused head must fit in one 128-lane tile"
    w1, b1, w2, b2, w3, b3, wm, bm, wl, bl = params
    obs_pad = _round_up(obs_dim, 16)      # bf16 sublane-tile alignment

    w1p = jnp.zeros((obs_pad, HIDDEN), jnp.float32).at[:obs_dim, :].set(w1)
    whp = jnp.zeros((HIDDEN, HIDDEN), jnp.float32)
    whp = whp.at[:, :act_dim].set(wm).at[:, act_dim:2 * act_dim].set(wl)

    w_packed = jnp.concatenate([w1p, w2, w3, whp], axis=0).astype(jnp.bfloat16)

    b_packed = jnp.zeros((8, HIDDEN), jnp.float32)
    b_packed = b_packed.at[0, :].set(b1[0])
    b_packed = b_packed.at[1, :].set(b2[0])
    b_packed = b_packed.at[2, :].set(b3[0])
    b_packed = b_packed.at[3, :act_dim].set(bm[0]).at[3, act_dim:2 * act_dim].set(bl[0])
    return w_packed, b_packed


@functools.partial(jax.jit, static_argnames=("obs_dim", "act_dim"))
def actor_forward(x, w_packed, b_packed, *, obs_dim, act_dim):
    """Pallas forward pass. Returns (mean, log_std)."""
    B = x.shape[0]
    obs_pad = w_packed.shape[0] - 3 * HIDDEN
    n_rows = w_packed.shape[0]

    tm = 256 if B >= 256 else 8           # batch tile (multiple of 8 sublanes)
    b_pad = _round_up(max(B, tm), tm)

    # pad batch (and obs, if needed) so all loads/stores are unmasked
    xp = jnp.zeros((b_pad, obs_pad), jnp.float32).at[:B, :obs_dim].set(x)

    kernel = _make_actor_kernel(obs_pad, act_dim)

    out = pl.pallas_call(
        kernel,
        out_shape=jax.ShapeDtypeStruct((b_pad, HEAD_PAD), jnp.float32),
        grid=(b_pad // tm,),
        in_specs=[
            pl.BlockSpec((tm, obs_pad), lambda i: (i, 0)),
            pl.BlockSpec((n_rows, HIDDEN), lambda i: (0, 0)),   # weights stay resident
            pl.BlockSpec((8, HIDDEN), lambda i: (0, 0)),        # biases stay resident
        ],
        out_specs=pl.BlockSpec((tm, HEAD_PAD), lambda i: (i, 0)),
        compiler_params=pltpu.CompilerParams(
            dimension_semantics=("parallel",)),
    )(xp, w_packed, b_packed)

    mean = out[:B, :act_dim]
    log_std = out[:B, act_dim:2 * act_dim]
    return mean, log_std


def init_params(key, obs_dim, act_dim):
    """Deterministic params mimicking torch.nn.Linear default init
    (uniform(-1/sqrt(fan_in), 1/sqrt(fan_in))), stored as (IN, OUT)."""
    def linear(k, fan_in, fan_out):
        kw, kb = jax.random.split(k)
        bound = 1.0 / jnp.sqrt(fan_in)
        w = jax.random.uniform(kw, (fan_in, fan_out), jnp.float32, -bound, bound)
        b = jax.random.uniform(kb, (1, fan_out), jnp.float32, -bound, bound)
        return w, b

    k1, k2, k3, k4, k5 = jax.random.split(key, 5)
    w1, b1 = linear(k1, obs_dim, HIDDEN)
    w2, b2 = linear(k2, HIDDEN, HIDDEN)
    w3, b3 = linear(k3, HIDDEN, HIDDEN)
    wm, bm = linear(k4, HIDDEN, act_dim)
    wl, bl = linear(k5, HIDDEN, act_dim)
    return (w1, b1, w2, b2, w3, b3, wm, bm, wl, bl)


def actor_forward_ref(x, params):
    """Pure-JAX f32 reference of Actor.forward for correctness checking."""
    (w1, b1, w2, b2, w3, b3, wm, bm, wl, bl) = params
    h = jnp.maximum(x @ w1 + b1, 0.0)
    h = jnp.maximum(h @ w2 + b2, 0.0)
    h = jnp.maximum(h @ w3 + b3, 0.0)
    mean = h @ wm + bm
    log_std = jnp.tanh(h @ wl + bl)
    log_std = LOG_STD_MIN + 0.5 * (LOG_STD_MAX - LOG_STD_MIN) * (log_std + 1.0)
    return mean, log_std


if __name__ == "__main__":
    key = jax.random.PRNGKey(0)
    k_x, k_p = jax.random.split(key)

    B = 2           # batch
    OBS_DIM = 16    # prod(env.single_observation_space.shape)
    ACT_DIM = 8     # prod(env.single_action_space.shape)

    x = jax.random.normal(k_x, (B, OBS_DIM), dtype=jnp.float32)
    params = init_params(k_p, OBS_DIM, ACT_DIM)
    w_packed, b_packed = pack_params(params, OBS_DIM, ACT_DIM)

    mean, log_std = actor_forward(x, w_packed, b_packed,
                                  obs_dim=OBS_DIM, act_dim=ACT_DIM)
    jax.block_until_ready((mean, log_std))

    mean_ref, log_std_ref = actor_forward_ref(x, params)
    # bf16 weights/activations inside the kernel -> looser tolerance vs f32 ref
    assert jnp.allclose(mean, mean_ref, atol=2e-2, rtol=2e-2)
    assert jnp.allclose(log_std, log_std_ref, atol=2e-2, rtol=2e-2)
    assert mean.shape == (B, ACT_DIM) and log_std.shape == (B, ACT_DIM)

    print("KERNEL_OK")
</pallas_src>

<mosaic_0001>
module attributes {stable_mosaic.version = 11 : i64} {
  func.func @kernel(%arg0: i32, %arg1: memref<8x16xf32, #tpu.memory_space<vmem>>, %arg2: memref<784x256xbf16, #tpu.memory_space<vmem>>, %arg3: memref<8x256xf32, #tpu.memory_space<vmem>>, %arg4: memref<8x128xf32, #tpu.memory_space<vmem>>) attributes {dimension_semantics = [#tpu.dimension_semantics<parallel>], iteration_bounds = array<i64: 1>, scalar_prefetch = 0 : i64, scratch_operands = 0 : i64, tpu.core_type = #tpu.core_type<tc>, window_params = [{transform_indices = @transform_0, window_bounds = array<i64: 8, 16>}, {pipeline_mode = #tpu.pipeline_mode<synchronous>, transform_indices = @transform_1, window_bounds = array<i64: 784, 256>}, {pipeline_mode = #tpu.pipeline_mode<synchronous>, transform_indices = @transform_2, window_bounds = array<i64: 8, 256>}, {transform_indices = @transform_3, window_bounds = array<i64: 8, 128>}]} {
    %c0 = arith.constant 0 : index
    %c0_0 = arith.constant 0 : index
    %0 = vector.load %arg1[%c0, %c0_0] : memref<8x16xf32, #tpu.memory_space<vmem>>, vector<8x16xf32>
    %1 = arith.truncf %0 : vector<8x16xf32> to vector<8x16xbf16>
    %c0_1 = arith.constant 0 : index
    %c0_2 = arith.constant 0 : index
    %2 = vector.load %arg2[%c0_1, %c0_2] : memref<784x256xbf16, #tpu.memory_space<vmem>>, vector<16x256xbf16>
    %cst = arith.constant dense<0.000000e+00> : vector<8x256xf32>
    %3 = tpu.matmul %1, %2, %cst {dimension_numbers = #tpu.dot_dimension_numbers<[1], [0], [0], [1], [0, 0, 1, 1], [], []>} : vector<8x16xbf16>, vector<16x256xbf16>, vector<8x256xf32> -> vector<8x256xf32>
    %c0_3 = arith.constant 0 : index
    %c0_4 = arith.constant 0 : index
    %4 = vector.load %arg3[%c0_3, %c0_4] : memref<8x256xf32, #tpu.memory_space<vmem>>, vector<1x256xf32>
    %5 = vector.broadcast %4 : vector<1x256xf32> to vector<8x256xf32>
    %6 = arith.addf %3, %5 : vector<8x256xf32>
    %cst_5 = arith.constant 0.000000e+00 : f32
    %7 = vector.broadcast %cst_5 : f32 to vector<8x256xf32>
    %8 = arith.maximumf %6, %7 : vector<8x256xf32>
    %9 = arith.truncf %8 : vector<8x256xf32> to vector<8x256xbf16>
    %c16 = arith.constant 16 : index
    %c0_6 = arith.constant 0 : index
    %10 = vector.load %arg2[%c16, %c0_6] : memref<784x256xbf16, #tpu.memory_space<vmem>>, vector<256x256xbf16>
    %cst_7 = arith.constant dense<0.000000e+00> : vector<8x256xf32>
    %11 = tpu.matmul %9, %10, %cst_7 {dimension_numbers = #tpu.dot_dimension_numbers<[1], [0], [0], [1], [0, 0, 1, 1], [], []>} : vector<8x256xbf16>, vector<256x256xbf16>, vector<8x256xf32> -> vector<8x256xf32>
    %c1 = arith.constant 1 : index
    %c0_8 = arith.constant 0 : index
    %12 = vector.load %arg3[%c1, %c0_8] : memref<8x256xf32, #tpu.memory_space<vmem>>, vector<1x256xf32>
    %13 = vector.broadcast %12 : vector<1x256xf32> to vector<8x256xf32>
    %14 = arith.addf %11, %13 : vector<8x256xf32>
    %cst_9 = arith.constant 0.000000e+00 : f32
    %15 = vector.broadcast %cst_9 : f32 to vector<8x256xf32>
    %16 = arith.maximumf %14, %15 : vector<8x256xf32>
    %17 = arith.truncf %16 : vector<8x256xf32> to vector<8x256xbf16>
    %c272 = arith.constant 272 : index
    %c0_10 = arith.constant 0 : index
    %18 = vector.load %arg2[%c272, %c0_10] : memref<784x256xbf16, #tpu.memory_space<vmem>>, vector<256x256xbf16>
    %cst_11 = arith.constant dense<0.000000e+00> : vector<8x256xf32>
    %19 = tpu.matmul %17, %18, %cst_11 {dimension_numbers = #tpu.dot_dimension_numbers<[1], [0], [0], [1], [0, 0, 1, 1], [], []>} : vector<8x256xbf16>, vector<256x256xbf16>, vector<8x256xf32> -> vector<8x256xf32>
    %c2 = arith.constant 2 : index
    %c0_12 = arith.constant 0 : index
    %20 = vector.load %arg3[%c2, %c0_12] : memref<8x256xf32, #tpu.memory_space<vmem>>, vector<1x256xf32>
    %21 = vector.broadcast %20 : vector<1x256xf32> to vector<8x256xf32>
    %22 = arith.addf %19, %21 : vector<8x256xf32>
    %cst_13 = arith.constant 0.000000e+00 : f32
    %23 = vector.broadcast %cst_13 : f32 to vector<8x256xf32>
    %24 = arith.maximumf %22, %23 : vector<8x256xf32>
    %25 = arith.truncf %24 : vector<8x256xf32> to vector<8x256xbf16>
    %c528 = arith.constant 528 : index
    %c0_14 = arith.constant 0 : index
    %26 = vector.load %arg2[%c528, %c0_14] : memref<784x256xbf16, #tpu.memory_space<vmem>>, vector<256x128xbf16>
    %cst_15 = arith.constant dense<0.000000e+00> : vector<8x128xf32>
    %27 = tpu.matmul %25, %26, %cst_15 {dimension_numbers = #tpu.dot_dimension_numbers<[1], [0], [0], [1], [0, 0, 1, 1], [], []>} : vector<8x256xbf16>, vector<256x128xbf16>, vector<8x128xf32> -> vector<8x128xf32>
    %c3 = arith.constant 3 : index
    %c0_16 = arith.constant 0 : index
    %28 = vector.load %arg3[%c3, %c0_16] : memref<8x256xf32, #tpu.memory_space<vmem>>, vector<1x128xf32>
    %29 = vector.broadcast %28 : vector<1x128xf32> to vector<8x128xf32>
    %30 = arith.addf %27, %29 : vector<8x128xf32>
    %31 = math.tanh %30 : vector<8x128xf32>
    %cst_17 = arith.constant 1.000000e+00 : f32
    %32 = vector.broadcast %cst_17 : f32 to vector<8x128xf32>
    %33 = arith.addf %31, %32 : vector<8x128xf32>
    %cst_18 = arith.constant 3.500000e+00 : f32
    %34 = vector.broadcast %cst_18 : f32 to vector<8x128xf32>
    %35 = arith.mulf %34, %33 : vector<8x128xf32>
    %cst_19 = arith.constant -5.000000e+00 : f32
    %36 = vector.broadcast %cst_19 : f32 to vector<8x128xf32>
    %37 = arith.addf %36, %35 : vector<8x128xf32>
    %38 = tpu.iota {dimensions = array<i32: 1>} : vector<8x128xi32>
    %c8_i32 = arith.constant 8 : i32
    %39 = vector.broadcast %c8_i32 : i32 to vector<8x128xi32>
    %40 = arith.cmpi slt, %38, %39 : vector<8x128xi32>
    %41 = arith.select %40, %30, %37 : vector<8x128xi1>, vector<8x128xf32>
    %c0_20 = arith.constant 0 : index
    %c0_21 = arith.constant 0 : index
    %42 = vector.load %arg4[%c0_20, %c0_21] : memref<8x128xf32, #tpu.memory_space<vmem>>, vector<8x128xf32>
    tpu.vector_store %arg4[%c0_20, %c0_21], %41 {strides = array<i32>} : memref<8x128xf32, #tpu.memory_space<vmem>>, vector<8x128xf32>,
    return
  }
  func.func @transform_0(%arg0: i32) -> (i32, i32) {
    %c0_i32 = arith.constant 0 : i32
    %c0_i32_0 = arith.constant 0 : i32
    return %arg0, %c0_i32 : i32, i32
  }
  func.func @transform_1(%arg0: i32) -> (i32, i32) {
    %c0_i32 = arith.constant 0 : i32
    %c0_i32_0 = arith.constant 0 : i32
    %c0_i32_1 = arith.constant 0 : i32
    return %c0_i32, %c0_i32_0 : i32, i32
  }
  func.func @transform_2(%arg0: i32) -> (i32, i32) {
    %c0_i32 = arith.constant 0 : i32
    %c0_i32_0 = arith.constant 0 : i32
    %c0_i32_1 = arith.constant 0 : i32
    return %c0_i32, %c0_i32_0 : i32, i32
  }
  func.func @transform_3(%arg0: i32) -> (i32, i32) {
    %c0_i32 = arith.constant 0 : i32
    %c0_i32_0 = arith.constant 0 : i32
    return %arg0, %c0_i32 : i32, i32
  }
}

</mosaic_0001>

<bundles_post_ra>
// kernel: actor_forward.1
= control target key start
LH: loop header
LB: loop body
LE: loop exit
PB: predicated region body
PF: predicated region fallthrough
CT: control target
= control target key end

     0   :  { %8 = vsyncpa [#allocation3], 0  ;;  %s1120_s0 = inlined_call_operand.vmem [shape: f32[8,16], index: 0, kind: input, shape index: {}]   ;;  %s1121_s1 = inlined_call_operand.hbm [shape: bf16[784,256], index: 1, kind: input, shape index: {}]   ;;  %s1122_s2 = inlined_call_operand.hbm [shape: f32[8,256], index: 2, kind: input, shape index: {}]   ;;  %s1123_s3 = inlined_call_operand.vmem [shape: f32[8,128], index: 3, kind: output, shape index: {}]  }
   0x1   :  { %9 = vsyncpa [#allocation5], 0  ;;  %s1071_s12 = smov [#allocation2]  }
   0x2   :  { %s17_s13 = sshll.u32 %s1071_s12, 4  ;;  %s18_s13 = int_to_ptr.vmem [resolvable:$true] %s17_s13 }
   0x3   :  { %s1035_s14 = scalar_lea.vmem %s18_s13, 12544  ;;  %p1040_p1 = scmp.lt.s32.totalorder %s18_s13, %s18_s13 }
   0x4   :  { %p1036_p0 = scmp.ne.s32.totalorder %s18_s13, %s1035_s14  ;;  %p1041_p2 = scmp.lt.s32.totalorder %s1035_s14, %s1035_s14 }
   0x6   :  { %p1042_p3 = por %p1041_p2, %p1040_p1 }
   0x8   :  { %p1043_p4 = pnand %p1042_p3, %p1036_p0 }
   0xa   :  { %1046 = shalt.err (!%p1043_p4)
}
   0xb   :  { %s1072_s15 = smov 128   ;;  %s1073_s16 = smov 8  }
   0xc   :  { %23 = dma.hbm_to_vmem [thread:$0]  %s1121_s1, 12544, %s18_s13, [#allocation3], %s1072_s15, %s1072_s15, %s1073_s16  }
   0xd   :  { %s1074_s19 = smov [#allocation4]  }
   0xe   :  { %s30_s20 = sshll.u32 %s1074_s19, 4  ;;  %s31_s20 = int_to_ptr.vmem [resolvable:$true] %s30_s20 }
   0xf   :  { %s1055_s21 = scalar_lea.vmem %s31_s20, 256  ;;  %p1060_p6 = scmp.lt.s32.totalorder %s31_s20, %s31_s20 }
  0x10   :  { %p1056_p5 = scmp.ne.s32.totalorder %s31_s20, %s1055_s21  ;;  %p1061_p7 = scmp.lt.s32.totalorder %s1055_s21, %s1055_s21 }
  0x12   :  { %p1062_p8 = por %p1061_p7, %p1060_p6 }
  0x14   :  { %p1063_p9 = pnand %p1062_p8, %p1056_p5 }
  0x16   :  { %1066 = shalt.err (!%p1063_p9)
}
  0x17   :  { %33 = dma.hbm_to_vmem [thread:$0]  %s1122_s2, 256, %s31_s20, [#allocation5]  }
  0x18   :  { %1067 = dma.done.wait [#allocation3], 12544  }
  0x19   :  { %1068 = vsyncadd [#allocation3], 4294954752 }
  0x1a   :  { %1069 = dma.done.wait [#allocation5], 256  }
  0x1b   :  { %1070 = vsyncadd [#allocation5], 4294967040  ;;  %v1075_v0 = vmov 0   ;;  %v910_v1 = vld [vmem:[#allocation2 + $0x4] ss:$8 sps:$4 sm:$0xff]   ;;  %vm67_vm0 = vcmask 130048  }
  0x1c   :  { %103 = vmatprep.mubr.bf16.mxu0 %v1075_v0  ;;  %v912_v2 = vld [vmem:[#allocation2] ss:$8 sps:$4 sm:$0xff]   ;;  %85 = vmatprep.subr.bf16.mxu0 %v910_v1  ;;  %v913_v5 = vld [vmem:[#allocation2 + $0x84] ss:$8 sps:$4 sm:$0xff]   ;;  %v916_v7 = vld [vmem:[#allocation2 + $0x74] ss:$8 sps:$4 sm:$0xff]   ;;  %v47_v1 = vlaneseq }
  0x1d   :  { %v41_v3 = vld [vmem:[%s1120_s0] sm:$0xff]  ;;  %86 = vmatpush1.bf16.msra.mxu0 %v912_v2  ;;  %321 = vmatprep.subr.bf16.mxu1 %v913_v5  ;;  %v918_v8 = vld [vmem:[#allocation2 + $0x70] ss:$8 sps:$4 sm:$0xff]   ;;  %v922_v11 = vld [vmem:[#allocation2 + $0x54] ss:$8 sps:$4 sm:$0xff]  }
  0x1e   :  { %v42_v4 = vpack.c.bf16 %v41_v3, %v41_v3  ;;  %v915_v6 = vld [vmem:[#allocation2 + $0x80] ss:$8 sps:$4 sm:$0xff]   ;;  %v919_v9 = vld [vmem:[#allocation2 + $0x64] ss:$8 sps:$4 sm:$0xff]   ;;  %v924_v12 = vld [vmem:[#allocation2 + $0x50] ss:$8 sps:$4 sm:$0xff]  }
  0x1f   :  { %322 = vmatpush1.bf16.msra.mxu1 %v915_v6  ;;  %v921_v10 = vld [vmem:[#allocation2 + $0x60] ss:$8 sps:$4 sm:$0xff]   ;;  %v925_v13 = vld [vmem:[#allocation2 + $0x44] ss:$8 sps:$4 sm:$0xff]   ;;  %v928_v15 = vld [vmem:[#allocation2 + $0x34] ss:$8 sps:$4 sm:$0xff]  }
  0x20   :  { %802 = vmatmul.mubr.msk.bf16.vlgmr.msra.gmra.mxu0 %vm67_vm0, %v42_v4  ;;  %323 = vmatprep.subr.bf16.mxu1 %v916_v7  ;;  %v927_v14 = vld [vmem:[#allocation2 + $0x40] ss:$8 sps:$4 sm:$0xff]   ;;  %v930_v16 = vld [vmem:[#allocation2 + $0x30] ss:$8 sps:$4 sm:$0xff]   ;;  %v931_v17 = vld [vmem:[#allocation2 + $0x24] ss:$8 sps:$4 sm:$0xff]  }
  0x21   :  { %v933_v18 = vld [vmem:[#allocation2 + $0x20] ss:$8 sps:$4 sm:$0xff]   ;;  %v934_v19 = vld [vmem:[#allocation2 + $0x14] ss:$8 sps:$4 sm:$0xff]   ;;  %v936_v20 = vld [vmem:[#allocation2 + $0x10] ss:$8 sps:$4 sm:$0xff]  }
  0x22   :  { %v937_v21 = vld [vmem:[#allocation2 + $0x104] ss:$8 sps:$4 sm:$0xff]   ;;  %v939_v22 = vld [vmem:[#allocation2 + $0x100] ss:$8 sps:$4 sm:$0xff]   ;;  %v940_v23 = vld [vmem:[#allocation2 + $0xf4] ss:$8 sps:$4 sm:$0xff]  }
  0x23   :  { %324 = vmatpush1.bf16.msra.mxu1 %v918_v8  ;;  %v942_v24 = vld [vmem:[#allocation2 + $0xf0] ss:$8 sps:$4 sm:$0xff]   ;;  %v943_v25 = vld [vmem:[#allocation2 + $0xe4] ss:$8 sps:$4 sm:$0xff]   ;;  %v945_v26 = vld [vmem:[#allocation2 + $0xe0] ss:$8 sps:$4 sm:$0xff]  }
  0x24   :  { %325 = vmatprep.subr.bf16.mxu1 %v919_v9  ;;  %v946_v27 = vld [vmem:[#allocation2 + $0xd4] ss:$8 sps:$4 sm:$0xff]   ;;  %v948_v28 = vld [vmem:[#allocation2 + $0xd0] ss:$8 sps:$4 sm:$0xff]   ;;  %v949_v29 = vld [vmem:[#allocation2 + $0xc4] ss:$8 sps:$4 sm:$0xff]  }
  0x25   :  { %v951_v30 = vld [vmem:[#allocation2 + $0xc0] ss:$8 sps:$4 sm:$0xff]   ;;  %v952_v31 = vld [vmem:[#allocation2 + $0xb4] ss:$8 sps:$4 sm:$0xff]   ;;  %v954_v32 = vld [vmem:[#allocation2 + $0xb0] ss:$8 sps:$4 sm:$0xff]  }
  0x26   :  { %v955_v33 = vld [vmem:[#allocation2 + $0xa4] ss:$8 sps:$4 sm:$0xff]   ;;  %v957_v34 = vld [vmem:[#allocation2 + $0xa0] ss:$8 sps:$4 sm:$0xff]   ;;  %v958_v35 = vld [vmem:[#allocation2 + $0x94] ss:$8 sps:$4 sm:$0xff]  }
  0x27   :  { %326 = vmatpush1.bf16.msra.mxu1 %v921_v10  ;;  %v960_v36 = vld [vmem:[#allocation2 + $0x90] ss:$8 sps:$4 sm:$0xff]   ;;  %v961_v37 = vld [vmem:[#allocation2 + $0x180] ss:$8 sps:$4 sm:$0xff]   ;;  %v963_v38 = vld [vmem:[#allocation2 + $0x184] ss:$8 sps:$4 sm:$0xff]  }
  0x28   :  { %327 = vmatprep.subr.bf16.mxu1 %v922_v11  ;;  %v966_v39 = vld [vmem:[#allocation2 + $0x174] ss:$8 sps:$4 sm:$0xff]   ;;  %571 = vmatprep.subr.bf16.mxu0 %v963_v38  ;;  %v964_v40 = vld [vmem:[#allocation2 + $0x170] ss:$8 sps:$4 sm:$0xff]   ;;  %v969_v41 = vld [vmem:[#allocation2 + $0x164] ss:$8 sps:$4 sm:$0xff]  }
  0x29   :  { %572 = vmatpush1.bf16.msra.mxu0 %v961_v37  ;;  %v967_v42 = vld [vmem:[#allocation2 + $0x160] ss:$8 sps:$4 sm:$0xff]   ;;  %v972_v43 = vld [vmem:[#allocation2 + $0x154] ss:$8 sps:$4 sm:$0xff]   ;;  %v970_v44 = vld [vmem:[#allocation2 + $0x150] ss:$8 sps:$4 sm:$0xff]  }
  0x2a   :  { %573 = vmatprep.subr.bf16.mxu0 %v966_v39  ;;  %v975_v45 = vld [vmem:[#allocation2 + $0x144] ss:$8 sps:$4 sm:$0xff]   ;;  %v973_v46 = vld [vmem:[#allocation2 + $0x140] ss:$8 sps:$4 sm:$0xff]   ;;  %v978_v47 = vld [vmem:[#allocation2 + $0x134] ss:$8 sps:$4 sm:$0xff]  }
  0x2b   :  { %328 = vmatpush1.bf16.msra.mxu1 %v924_v12  ;;  %v976_v48 = vld [vmem:[#allocation2 + $0x130] ss:$8 sps:$4 sm:$0xff]   ;;  %v981_v49 = vld [vmem:[#allocation2 + $0x124] ss:$8 sps:$4 sm:$0xff]   ;;  %v979_v50 = vld [vmem:[#allocation2 + $0x120] ss:$8 sps:$4 sm:$0xff]  }
  0x2c   :  { %329 = vmatprep.subr.bf16.mxu1 %v925_v13  ;;  %v984_v51 = vld [vmem:[#allocation2 + $0x114] ss:$8 sps:$4 sm:$0xff]   ;;  %v982_v52 = vld [vmem:[#allocation2 + $0x110] ss:$8 sps:$4 sm:$0xff]   ;;  %v987_v53 = vld [vmem:[#allocation2 + $0x204] ss:$8 sps:$4 sm:$0xff]  }
  0x2d   :  { %574 = vmatpush1.bf16.msra.mxu0 %v964_v40  ;;  %v985_v54 = vld [vmem:[#allocation2 + $0x200] ss:$8 sps:$4 sm:$0xff]   ;;  %v990_v55 = vld [vmem:[#allocation2 + $0x1f4] ss:$8 sps:$4 sm:$0xff]   ;;  %v988_v56 = vld [vmem:[#allocation2 + $0x1f0] ss:$8 sps:$4 sm:$0xff]  }
  0x2e   :  { %575 = vmatprep.subr.bf16.mxu0 %v969_v41  ;;  %v993_v57 = vld [vmem:[#allocation2 + $0x1e4] ss:$8 sps:$4 sm:$0xff]   ;;  %v991_v58 = vld [vmem:[#allocation2 + $0x1e0] ss:$8 sps:$4 sm:$0xff]   ;;  %v996_v59 = vld [vmem:[#allocation2 + $0x1d4] ss:$8 sps:$4 sm:$0xff]  }
  0x2f   :  { %330 = vmatpush1.bf16.msra.mxu1 %v927_v14  ;;  %v994_v60 = vld [vmem:[#allocation2 + $0x1d0] ss:$8 sps:$4 sm:$0xff]   ;;  %v999_v61 = vld [vmem:[#allocation2 + $0x1c4] ss:$8 sps:$4 sm:$0xff]   ;;  %v997_v62 = vld [vmem:[#allocation2 + $0x1c0] ss:$8 sps:$4 sm:$0xff]  }
  0x30   :  { %331 = vmatprep.subr.bf16.mxu1 %v928_v15  ;;  %v1002_v63 = vld [vmem:[#allocation2 + $0x1b4] ss:$8 sps:$4 sm:$0xff]   ;;  %v1000_v0 = vld [vmem:[#allocation2 + $0x1b0] ss:$8 sps:$4 sm:$0xff]   ;;  %v48_v2 = vshrl.u32 %v47_v1, 7 }
  0x31   :  { %576 = vmatpush1.bf16.msra.mxu0 %v967_v42  ;;  %v45_v4 = vld [vmem:[#allocation4] ss:$8 sm:$0x3] }
  0x32   :  { %577 = vmatprep.subr.bf16.mxu0 %v972_v43  ;;  %v1106_v3 = vsub.s32 0, %v48_v2  ;;  %v1108_v5 = vsub.s32 1, %v48_v2  ;;  %v648_v2 = vld [vmem:[#allocation4 + $0x3] ss:$0 sm:$0xff] }
  0x33   :  { %332 = vmatpush1.bf16.msra.mxu1 %v930_v16 }
  0x34   :  { %333 = vmatprep.subr.bf16.mxu1 %v931_v17  ;;  %v50_v6 = vrot.slane %v45_v4, %v1106_v3  ;;  %v54_v7 = vrot.slane %v45_v4, %v1108_v5 }
  0x35   :  { %578 = vmatpush1.bf16.msra.mxu0 %v970_v44 }
  0x36   :  { %579 = vmatprep.subr.bf16.mxu0 %v975_v45 }
  0x37   :  { %334 = vmatpush1.bf16.msra.mxu1 %v933_v18  ;;  %v1005_v18 = vld [vmem:[#allocation2 + $0x1a4] ss:$8 sps:$4 sm:$0xff]  }
  0x38   :  { %335 = vmatprep.subr.bf16.mxu1 %v934_v19  ;;  %v1003_v19 = vld [vmem:[#allocation2 + $0x1a0] ss:$8 sps:$4 sm:$0xff]  }
  0x39   :  { %580 = vmatpush1.bf16.msra.mxu0 %v973_v46 }
  0x3a   :  { %581 = vmatprep.subr.bf16.mxu0 %v978_v47  ;;  %v1021_v47 = vld [vmem:[#allocation2 + $0x2a0] ss:$8 sps:$4 sm:$0xff]  }
  0x3b   :  { %336 = vmatpush1.bf16.msra.mxu1 %v936_v20  ;;  %v1008_v20 = vld [vmem:[#allocation2 + $0x194] ss:$8 sps:$4 sm:$0xff]  }
  0x3c   :  { %337 = vmatprep.subr.bf16.mxu1 %v937_v21  ;;  %v1006_v21 = vld [vmem:[#allocation2 + $0x190] ss:$8 sps:$4 sm:$0xff]  }
  0x3d   :  { %582 = vmatpush1.bf16.msra.mxu0 %v976_v48  ;;  %v1022_v48 = vld [vmem:[#allocation2 + $0x220] ss:$8 sps:$4 sm:$0xff]  }
  0x3e   :  { %583 = vmatprep.subr.bf16.mxu0 %v981_v49  ;;  %v1023_v49 = vld [vmem:[#allocation2 + $0x290] ss:$8 sps:$4 sm:$0xff]  }
  0x3f   :  { %338 = vmatpush2.bf16.msra.mxu1 %v939_v22  ;;  %v1009_v22 = vld [vmem:[#allocation2 + $0x300] ss:$8 sps:$4 sm:$0xff]  }
  0x40   :  { %339 = vmatprep.subr.bf16.mxu1 %v940_v23  ;;  %v1010_v23 = vld [vmem:[#allocation2 + $0x280] ss:$8 sps:$4 sm:$0xff]  }
  0x41   :  { %584 = vmatpush1.bf16.msra.mxu0 %v979_v50  ;;  %v1024_v50 = vld [vmem:[#allocation2 + $0x210] ss:$8 sps:$4 sm:$0xff]  }
  0x42   :  { %585 = vmatprep.subr.bf16.mxu0 %v984_v51  ;;  %v399_v51 = vld [vmem:[#allocation4 + $0x2] ss:$8 sm:$0x3] }
  0x43   :  { %340 = vmatpush2.bf16.msra.mxu1 %v942_v24  ;;  %v1011_v24 = vld [vmem:[#allocation2 + $0x2f0] ss:$8 sps:$4 sm:$0xff]  }
  0x44   :  { %341 = vmatprep.subr.bf16.mxu1 %v943_v25  ;;  %v1012_v25 = vld [vmem:[#allocation2 + $0x270] ss:$8 sps:$4 sm:$0xff]  }
  0x45   :  { %586 = vmatpush1.bf16.msra.mxu0 %v982_v52  ;;  %v404_v52 = vrot.slane %v399_v51, %v1106_v3 }
  0x46   :  { %587 = vmatprep.subr.bf16.mxu0 %v987_v53  ;;  %v408_v53 = vrot.slane %v399_v51, %v1108_v5 }
  0x47   :  { %342 = vmatpush2.bf16.msra.mxu1 %v945_v26  ;;  %v1013_v26 = vld [vmem:[#allocation2 + $0x2e0] ss:$8 sps:$4 sm:$0xff]  }
  0x48   :  { %343 = vmatprep.subr.bf16.mxu1 %v946_v27  ;;  %v1014_v27 = vld [vmem:[#allocation2 + $0x260] ss:$8 sps:$4 sm:$0xff]  }
  0x49   :  { %588 = vmatpush2.bf16.msra.mxu0 %v985_v54 }
  0x4a   :  { %589 = vmatprep.subr.bf16.mxu0 %v990_v55 }
  0x4b   :  { %344 = vmatpush2.bf16.msra.mxu1 %v948_v28  ;;  %v1015_v28 = vld [vmem:[#allocation2 + $0x2d0] ss:$8 sps:$4 sm:$0xff]  }
  0x4c   :  { %345 = vmatprep.subr.bf16.mxu1 %v949_v29  ;;  %v1016_v29 = vld [vmem:[#allocation2 + $0x250] ss:$8 sps:$4 sm:$0xff]  }
  0x4d   :  { %590 = vmatpush2.bf16.msra.mxu0 %v988_v56 }
  0x4e   :  { %591 = vmatprep.subr.bf16.mxu0 %v993_v57 }
  0x4f   :  { %346 = vmatpush2.bf16.msra.mxu1 %v951_v30  ;;  %v1017_v30 = vld [vmem:[#allocation2 + $0x2c0] ss:$8 sps:$4 sm:$0xff]  }
  0x50   :  { %347 = vmatprep.subr.bf16.mxu1 %v952_v31  ;;  %v1018_v31 = vld [vmem:[#allocation2 + $0x240] ss:$8 sps:$4 sm:$0xff]  }
  0x51   :  { %592 = vmatpush2.bf16.msra.mxu0 %v991_v58 }
  0x52   :  { %593 = vmatprep.subr.bf16.mxu0 %v996_v59 }
  0x53   :  { %348 = vmatpush2.bf16.msra.mxu1 %v954_v32  ;;  %v1019_v32 = vld [vmem:[#allocation2 + $0x2b0] ss:$8 sps:$4 sm:$0xff]  }
  0x54   :  { %349 = vmatprep.subr.bf16.mxu1 %v955_v33  ;;  %v1020_v33 = vld [vmem:[#allocation2 + $0x230] ss:$8 sps:$4 sm:$0xff]  }
  0x55   :  { %594 = vmatpush2.bf16.msra.mxu0 %v994_v60 }
  0x56   :  { %595 = vmatprep.subr.bf16.mxu0 %v999_v61 }
  0x57   :  { %350 = vmatpush2.bf16.msra.mxu1 %v957_v34  ;;  %v149_v34 = vld [vmem:[#allocation4 + $0x1] ss:$8 sm:$0x3] }
  0x58   :  { %351 = vmatprep.subr.bf16.mxu1 %v958_v35  ;;  %v154_v35 = vrot.slane %v149_v34, %v1106_v3 }
  0x59   :  { %596 = vmatpush2.bf16.msra.mxu0 %v997_v62 }
  0x5a   :  { %597 = vmatprep.subr.bf16.mxu0 %v1002_v63 }
  0x5b   :  { %352 = vmatpush2.bf16.msra.mxu1 %v960_v36  ;;  %v158_v36 = vrot.slane %v149_v34, %v1108_v5 }
  0x5c   :  { %883 = vmatprep.subr.bf16.mxu1 %v1009_v22 }
  0x5d   :  { %598 = vmatpush2.bf16.msra.mxu0 %v1000_v0 }
  0x5e   :  { %599 = vmatprep.subr.bf16.mxu0 %v1005_v18 }
  0x61   :  { %600 = vmatpush2.bf16.msra.mxu0 %v1003_v19 }
  0x62   :  { %601 = vmatprep.subr.bf16.mxu0 %v1008_v20 }
  0x65   :  { %602 = vmatpush2.bf16.msra.mxu0 %v1006_v21 }
  0xe0   :  { %v105_v8 = vpop.f32.mrf.mxu0 }
  0xe1   :  { %v106_v9 = vadd.f32 %v105_v8, %v50_v6 }
  0xe2   :  { %v107_v10 = vpop.f32.mrf.mxu0 }
  0xe3   :  { %v108_v11 = vadd.f32 %v107_v10, %v54_v7  ;;  %v112_v12 = vmax.f32 %v106_v9, 0.0  ;;  %v790_v9 = vand.u32 127, %v47_v1 }
  0xe4   :  { %v109_v13 = vpop.f32.mrf.mxu0 }
  0xe5   :  { %v113_v14 = vmax.f32 %v108_v11, 0.0  ;;  %v114_v17 = vpack.c.bf16 %v112_v12, %v112_v12  ;;  %vm791_vm1 = vcmp.lt.s32.totalorder %v790_v9, 8 }
  0xe6   :  { %v110_v15 = vpop.f32.mrf.mxu0 }
  0xe7   :  { %v115_v16 = vpack.c.bf16 %v113_v14, %v113_v14 }
  0xe9   :  { %353 = vmatprep.mubr.bf16.mxu1 %v115_v16 }
  0xea   :  { %354 = vmatmul.mubr.bf16.vlgmr.msra.gmra.mxu1 %v114_v17 }
  0xeb   :  { %884 = vmatpush3.bf16.msra.mxu1 %v1010_v23 }
  0xec   :  { %885 = vmatprep.subr.bf16.mxu1 %v1011_v24 }
  0xef   :  { %886 = vmatpush3.bf16.msra.mxu1 %v1012_v25 }
  0xf0   :  { %887 = vmatprep.subr.bf16.mxu1 %v1013_v26 }
  0xf3   :  { %888 = vmatpush3.bf16.msra.mxu1 %v1014_v27 }
  0xf4   :  { %889 = vmatprep.subr.bf16.mxu1 %v1015_v28 }
  0xf7   :  { %890 = vmatpush3.bf16.msra.mxu1 %v1016_v29 }
  0xf8   :  { %891 = vmatprep.subr.bf16.mxu1 %v1017_v30 }
  0xfb   :  { %892 = vmatpush3.bf16.msra.mxu1 %v1018_v31 }
  0xfc   :  { %893 = vmatprep.subr.bf16.mxu1 %v1019_v32 }
  0xff   :  { %894 = vmatpush3.bf16.msra.mxu1 %v1020_v33 }
 0x100   :  { %895 = vmatprep.subr.bf16.mxu1 %v1021_v47 }
 0x103   :  { %896 = vmatpush3.bf16.msra.mxu1 %v1022_v48 }
 0x104   :  { %897 = vmatprep.subr.bf16.mxu1 %v1023_v49 }
 0x107   :  { %898 = vmatpush3.bf16.msra.mxu1 %v1024_v50 }
 0x1aa   :  { %v355_v37 = vpop.f32.mrf.mxu1 }
 0x1ab   :  { %v356_v38 = vadd.f32 %v355_v37, %v154_v35 }
 0x1ac   :  { %v357_v39 = vpop.f32.mrf.mxu1 }
 0x1ad   :  { %v358_v40 = vadd.f32 %v357_v39, %v158_v36  ;;  %v362_v41 = vmax.f32 %v356_v38, 0.0 }
 0x1ae   :  { %v359_v42 = vpop.f32.mrf.mxu1 }
 0x1af   :  { %v363_v43 = vmax.f32 %v358_v40, 0.0  ;;  %v364_v46 = vpack.c.bf16 %v362_v41, %v362_v41 }
 0x1b0   :  { %v360_v44 = vpop.f32.mrf.mxu1 }
 0x1b1   :  { %v365_v45 = vpack.c.bf16 %v363_v43, %v363_v43 }
 0x1b3   :  { %603 = vmatprep.mubr.bf16.mxu0 %v365_v45 }
 0x1b4   :  { %604 = vmatmul.mubr.bf16.vlgmr.msra.gmra.mxu0 %v364_v46 }
 0x274   :  { %v605_v54 = vpop.f32.mrf.mxu0 }
 0x275   :  { %v606_v55 = vadd.f32 %v605_v54, %v404_v52 }
 0x276   :  { %v607_v56 = vpop.f32.mrf.mxu0 }
 0x277   :  { %v608_v57 = vadd.f32 %v607_v56, %v408_v53  ;;  %v612_v58 = vmax.f32 %v606_v55, 0.0 }
 0x278   :  { %v609_v59 = vpop.f32.mrf.mxu0 }
 0x279   :  { %v613_v60 = vmax.f32 %v608_v57, 0.0  ;;  %v614_v63 = vpack.c.bf16 %v612_v58, %v612_v58 }
 0x27a   :  { %v610_v61 = vpop.f32.mrf.mxu0 }
 0x27b   :  { %v615_v62 = vpack.c.bf16 %v613_v60, %v613_v60 }
 0x27d   :  { %777 = vmatprep.mubr.bf16.mxu1 %v615_v62 }
 0x27e   :  { %778 = vmatmul.mubr.bf16.vlgmr.msra.gmra.mxu1 %v614_v63 }
 0x33e   :  { %v899_v0 = vpop.f32.mrf.mxu1 }
 0x340   :  { %v900_v4 = vpop.f32.mrf.mxu1 }
 0x341   :  { %v901_v6 = vadd.f32 %v900_v4, %v899_v0 }
 0x342   :  { %v902_v7 = vpop.f32.mrf.mxu1 }
 0x343   :  { %v780_v3 = vadd.f32 %v901_v6, %v648_v2 }
 0x344   :  { %v903_v8 = vpop.f32.mrf.mxu1 }
 0x345   :  { %1025 = vtanh.f32 %v780_v3 }
 0x352   :  { %v1026_v5 = vpop.eup %1025 }
 0x353   :  { %v786_v10 = vadd.f32 1.0, %v1026_v5 }
 0x355   :  { %v787_v11 = vmul.f32 3.5, %v786_v10 }
 0x357   :  { %v788_v12 = vadd.f32 -5.0, %v787_v11 }
 0x359   :  { %v792_v13 = vsel %vm791_vm1, %v780_v3, %v788_v12 }
 0x35a   :  { %793 = vst [vmem:[%s1123_s3] sm:$0xff] %v792_v13 }
 0x35b   :  { %798 = vsyncpa [#allocation3], 1 }
 0x35c   :  { %799 = vsyncpa [#allocation5], 1 }

</bundles_post_ra>
